<compile_context>
chip_gen: v7x
topology: tpu7x:2x2x1
jax: 0.10.0
libtpu: 0.0.40
codegen_flags: <defaults>
</compile_context>

<pallas_src>
import functools

import numpy as np
import jax
import jax.numpy as jnp
from jax.experimental import pallas as pl
from jax.experimental.pallas import tpu as pltpu

# --- ResBlock defaults (input=False -> start == filters) -------------------------
NUM_LAYERS = 3
DILATIONS = (1, 2, 4)
FILTERS = 64
START = FILTERS


# --- Pallas kernel ----------------------------------------------------------------
def resblock_kernel(x_ref, w0_ref, b0_ref, w12_ref, b12_ref, o_ref, *, concat_taps):
    NB, C, L = x_ref.shape

    # NCL -> NLC relayout: one whole-block transpose (XLU work, overlaps MXU).
    x = jnp.transpose(x_ref[...], (0, 2, 1))                       # (NB, L, C) f32

    def shifted_taps(h, lp, rp):
        # PyTorch 'same' for k=2, dilation d (left pad lp=d//2, right pad rp=d-lp):
        #   a[t] = h[t - lp] (zeros for t < lp),  c[t] = h[t + rp] (zeros for t >= L-rp).
        a = h if lp == 0 else jnp.concatenate(
            [jnp.zeros((NB, lp, C), h.dtype), h[:, :L - lp, :]], axis=1)
        c = jnp.concatenate(
            [h[:, rp:, :], jnp.zeros((NB, rp, C), h.dtype)], axis=1)
        return a, c

    def tap_dot(a, c, w, bias):
        af = a.reshape(NB * L, C).astype(w.dtype)
        cf = c.reshape(NB * L, C).astype(w.dtype)
        if concat_taps:
            # Fused K=2C=128 form: exact MXU fit, preferred on v5e (3 XLUs).
            ac = jnp.concatenate([af, cf], axis=-1)
            y = jnp.dot(ac, w, preferred_element_type=jnp.float32)
        else:
            # Split dots: no (NB*L, 2C) lane-concat temp, preferred on v6e/v7x (2 XLUs).
            y = (jnp.dot(af, w[:C], preferred_element_type=jnp.float32)
                 + jnp.dot(cf, w[C:], preferred_element_type=jnp.float32))
        return y + bias

    # Layer 0 (d=1, lp=0) fused with the 1x1 recon conv:
    #   W0_aug = [[W0_tap0, Wr], [W0_tap1, 0]],  bias = [b0, br].
    a0, c0 = shifted_taps(x, 0, 1)
    y0 = tap_dot(a0, c0, w0_ref[...], b0_ref[...])                 # (NB*L, 2C) f32
    h = jnp.maximum(y0[:, :C], 0.0)                                # conv branch (ReLU)
    recon = y0[:, C:]                                              # residual branch
    # Dropout(p=0.25) is identity at inference.
    # TODO(synk): training-mode dropout is not implemented in-kernel.

    for l in range(1, NUM_LAYERS):
        d = DILATIONS[l]
        lp, rp = d // 2, d - d // 2
        a, c = shifted_taps(h.reshape(NB, L, C), lp, rp)
        h = jnp.maximum(tap_dot(a, c, w12_ref[l - 1], b12_ref[l - 1]), 0.0)

    out = jnp.maximum(h + recon, 0.0).reshape(NB, L, C)

    # NLC -> NCL store (lane-dense whenever production L >= 128).
    o_ref[...] = jnp.transpose(out, (0, 2, 1)).astype(o_ref.dtype)


# --- wrapper ------------------------------------------------------------------------
def resblock_forward(x_ncl, w0_aug, b0_aug, w12, b12, *,
                     batch_block=None, dot_dtype=jnp.float32, concat_taps=False):
    N, C, L = x_ncl.shape
    x_ncl = x_ncl.astype(jnp.float32)
    if dot_dtype != jnp.float32:
        # bf16 MXU path (recommended on v6e/v7x): cast weights once here, operands
        # in-kernel; f32 accumulation + f32 activations keep the VPU math v5e-legal.
        w0_aug = w0_aug.astype(dot_dtype)
        w12 = w12.astype(dot_dtype)

    if batch_block is None:
        # VMEM-budgeted tile: ~14 live f32 (L, C) activation planes per batch row plus
        # double-buffered in/out blocks ~= 3.5 KiB per (n, t) sample -> cap at ~8K rows
        # per step, while keeping >= 4 grid steps when the batch allows (>= 2 minimum
        # for v7x's two TensorCores).
        rows_budget = 8192
        batch_block = max(1, min(rows_budget // max(L, 1), pl.cdiv(N, 4)))
        while N % batch_block != 0:
            batch_block -= 1
    assert N % batch_block == 0, "batch must be divisible by batch_block"

    # Scoped VMEM limit: generous, but within every generation's physical VMEM
    # (v7x TensorCore has 64 MiB).
    est_bytes = 18 * batch_block * L * C * 4 + 6 * (2 * C) * (2 * C) * 4
    vmem_limit = int(min(max(est_bytes, 32 * 1024 * 1024), 64 * 1024 * 1024))

    kernel = functools.partial(resblock_kernel, concat_taps=concat_taps)
    return pl.pallas_call(
        kernel,
        out_shape=jax.ShapeDtypeStruct((N, C, L), jnp.float32),
        grid=(N // batch_block,),
        in_specs=[
            # TODO(synk): add pipeline_mode=pl.Buffered(3) here if the input DMA is
            # still exposed in profiles after retiling.
            pl.BlockSpec((batch_block, C, L), lambda n: (n, 0, 0)),
            pl.BlockSpec((2 * C, 2 * C), lambda n: (0, 0)),
            pl.BlockSpec((1, 2 * C), lambda n: (0, 0)),
            pl.BlockSpec((NUM_LAYERS - 1, 2 * C, C), lambda n: (0, 0, 0)),
            pl.BlockSpec((NUM_LAYERS - 1, 1, C), lambda n: (0, 0, 0)),
        ],
        out_specs=pl.BlockSpec((batch_block, C, L), lambda n: (n, 0, 0)),
        compiler_params=pltpu.CompilerParams(
            dimension_semantics=("parallel",),
            vmem_limit_bytes=vmem_limit),
    )(x_ncl, w0_aug, b0_aug, w12, b12)


# --- deterministic parameter init (weight_norm applied explicitly: w = g * v / ||v||) ---
def init_params(key):
    keys = jax.random.split(key, 3 * NUM_LAYERS + 2)
    taps, biases = [], []
    c_in = START
    for l in range(NUM_LAYERS):
        kv, kg, kb = keys[3 * l], keys[3 * l + 1], keys[3 * l + 2]
        fan_in = c_in * 2
        v = jax.random.normal(kv, (FILTERS, c_in, 2), jnp.float32) / np.sqrt(fan_in)
        g = jax.random.uniform(kg, (FILTERS,), jnp.float32, 0.5, 1.5)
        norm = jnp.sqrt(jnp.sum(v * v, axis=(1, 2), keepdims=True))
        w_eff = g[:, None, None] * v / norm                      # (C_out, C_in, 2)
        w_cat = jnp.concatenate([w_eff[:, :, 0].T, w_eff[:, :, 1].T], axis=0)  # (2C_in, C_out)
        taps.append(w_cat)
        biases.append(jax.random.normal(kb, (1, FILTERS), jnp.float32) * 0.05)
        c_in = FILTERS
    kwr, kbr = keys[-2], keys[-1]
    wr = (jax.random.normal(kwr, (FILTERS, START, 1), jnp.float32) / np.sqrt(START))[:, :, 0].T
    br = jax.random.normal(kbr, (1, FILTERS), jnp.float32) * 0.05

    # Fuse the 1x1 recon conv into layer 0:
    #   W0_aug = [[W0_tap0, Wr], [W0_tap1, 0]]  (2C, 2C),  b0_aug = [b0, br]  (1, 2C).
    w0 = taps[0]
    w0_aug = jnp.concatenate(
        [jnp.concatenate([w0[:START], wr], axis=1),
         jnp.concatenate([w0[START:], jnp.zeros_like(wr)], axis=1)], axis=0)
    b0_aug = jnp.concatenate([biases[0], br], axis=1)
    w12 = jnp.stack(taps[1:])                                    # (2, 2C, C)
    b12 = jnp.stack(biases[1:])                                  # (2, 1, C)
    return w0_aug, b0_aug, w12, b12


# --- plain-JAX reference (mirrors PyTorch Conv1d padding='same', k=2, dilated) ----------
def resblock_ref(x_ncl, w0_aug, b0_aug, w12, b12):
    x = jnp.transpose(x_ncl, (0, 2, 1)).astype(jnp.float32)     # (N, L, C)
    _, L, C = x.shape

    def conv_k2(h, w_cat, bias, d):
        lp, rp = d // 2, d - d // 2
        hp = jnp.pad(h, ((0, 0), (lp, rp), (0, 0)))
        return hp[:, :L] @ w_cat[:C] + hp[:, d:d + L] @ w_cat[C:] + bias

    y0 = conv_k2(x, w0_aug, b0_aug, DILATIONS[0])
    h = jax.nn.relu(y0[:, :, :C])
    recon = y0[:, :, C:]
    for l in range(1, NUM_LAYERS):
        h = jax.nn.relu(conv_k2(h, w12[l - 1], b12[l - 1], DILATIONS[l]))
    out = jax.nn.relu(h + recon)
    return jnp.transpose(out, (0, 2, 1))


if __name__ == "__main__":
    key = jax.random.PRNGKey(0)
    kx, kp = jax.random.split(key)

    N, L = 2, 16
    x = jax.random.normal(kx, (N, START, L), jnp.float32)        # PyTorch layout (N, C, L)
    w0_aug, b0_aug, w12, b12 = init_params(kp)

    ref = jax.block_until_ready(resblock_ref(x, w0_aug, b0_aug, w12, b12))

    # Default path (f32, split-tap dots: v6e/v7x preference).
    out = jax.block_until_ready(resblock_forward(x, w0_aug, b0_aug, w12, b12))
    np.testing.assert_allclose(np.asarray(out), np.asarray(ref), rtol=1e-3, atol=1e-3)

    # v5e-style fused K=128 lane-concat variant.
    out_cat = jax.block_until_ready(
        resblock_forward(x, w0_aug, b0_aug, w12, b12, concat_taps=True))
    np.testing.assert_allclose(np.asarray(out_cat), np.asarray(ref), rtol=1e-3, atol=1e-3)

    # bf16 MXU-operand path (f32 accumulation) recommended on v6e/v7x.
    out_bf16 = jax.block_until_ready(
        resblock_forward(x, w0_aug, b0_aug, w12, b12, dot_dtype=jnp.bfloat16))
    np.testing.assert_allclose(np.asarray(out_bf16), np.asarray(ref), rtol=5e-2, atol=5e-2)

    print("KERNEL_OK")
</pallas_src>

<mosaic_0001>
module attributes {stable_mosaic.version = 11 : i64} {
  func.func @resblock_kernel(%arg0: i32, %arg1: memref<1x64x16xf32, #tpu.memory_space<vmem>>, %arg2: memref<128x128xf32, #tpu.memory_space<vmem>>, %arg3: memref<1x128xf32, #tpu.memory_space<vmem>>, %arg4: memref<2x128x64xf32, #tpu.memory_space<vmem>>, %arg5: memref<2x1x64xf32, #tpu.memory_space<vmem>>, %arg6: memref<1x64x16xf32, #tpu.memory_space<vmem>>) attributes {dimension_semantics = [#tpu.dimension_semantics<parallel>], iteration_bounds = array<i64: 2>, scalar_prefetch = 0 : i64, scratch_operands = 0 : i64, tpu.core_type = #tpu.core_type<tc>, window_params = [{transform_indices = @transform_0, window_bounds = array<i64: 1, 64, 16>}, {pipeline_mode = #tpu.pipeline_mode<synchronous>, transform_indices = @transform_1, window_bounds = array<i64: 128, 128>}, {pipeline_mode = #tpu.pipeline_mode<synchronous>, transform_indices = @transform_2, window_bounds = array<i64: 1, 128>}, {pipeline_mode = #tpu.pipeline_mode<synchronous>, transform_indices = @transform_3, window_bounds = array<i64: 2, 128, 64>}, {pipeline_mode = #tpu.pipeline_mode<synchronous>, transform_indices = @transform_4, window_bounds = array<i64: 2, 1, 64>}, {transform_indices = @transform_5, window_bounds = array<i64: 1, 64, 16>}]} {
    %c0 = arith.constant 0 : index
    %c0_0 = arith.constant 0 : index
    %c0_1 = arith.constant 0 : index
    %0 = vector.load %arg1[%c0, %c0_0, %c0_1] : memref<1x64x16xf32, #tpu.memory_space<vmem>>, vector<1x64x16xf32>
    %1 = tpu.transpose %0, [0, 2, 1] : vector<1x64x16xf32> -> vector<1x16x64xf32>
    %2 = vector.extract_strided_slice %1 {offsets = [0, 1, 0], sizes = [1, 15, 64], strides = [1, 1, 1]} : vector<1x16x64xf32> to vector<1x15x64xf32>
    %cst = arith.constant 0.000000e+00 : f32
    %3 = vector.broadcast %cst : f32 to vector<1x1x64xf32>
    %4 = tpu.concatenate %2, %3 in 1 : vector<1x15x64xf32>, vector<1x1x64xf32> -> vector<1x16x64xf32>
    %c0_2 = arith.constant 0 : index
    %c0_3 = arith.constant 0 : index
    %5 = vector.load %arg2[%c0_2, %c0_3] : memref<128x128xf32, #tpu.memory_space<vmem>>, vector<128x128xf32>
    %c0_4 = arith.constant 0 : index
    %c0_5 = arith.constant 0 : index
    %6 = vector.load %arg3[%c0_4, %c0_5] : memref<1x128xf32, #tpu.memory_space<vmem>>, vector<1x128xf32>
    %7 = vector.shape_cast %1 : vector<1x16x64xf32> to vector<16x64xf32>
    %8 = vector.shape_cast %4 : vector<1x16x64xf32> to vector<16x64xf32>
    %9 = vector.extract_strided_slice %5 {offsets = [0, 0], sizes = [64, 128], strides = [1, 1]} : vector<128x128xf32> to vector<64x128xf32>
    %cst_6 = arith.constant dense<0.000000e+00> : vector<16x128xf32>
    %10 = tpu.matmul %7, %9, %cst_6 {dimension_numbers = #tpu.dot_dimension_numbers<[1], [0], [0], [1], [0, 0, 1, 1], [], []>} : vector<16x64xf32>, vector<64x128xf32>, vector<16x128xf32> -> vector<16x128xf32>
    %11 = vector.extract_strided_slice %5 {offsets = [64, 0], sizes = [64, 128], strides = [1, 1]} : vector<128x128xf32> to vector<64x128xf32>
    %cst_7 = arith.constant dense<0.000000e+00> : vector<16x128xf32>
    %12 = tpu.matmul %8, %11, %cst_7 {dimension_numbers = #tpu.dot_dimension_numbers<[1], [0], [0], [1], [0, 0, 1, 1], [], []>} : vector<16x64xf32>, vector<64x128xf32>, vector<16x128xf32> -> vector<16x128xf32>
    %13 = arith.addf %10, %12 : vector<16x128xf32>
    %14 = vector.broadcast %6 : vector<1x128xf32> to vector<16x128xf32>
    %15 = arith.addf %13, %14 : vector<16x128xf32>
    %16 = vector.extract_strided_slice %15 {offsets = [0, 0], sizes = [16, 64], strides = [1, 1]} : vector<16x128xf32> to vector<16x64xf32>
    %cst_8 = arith.constant 0.000000e+00 : f32
    %17 = vector.broadcast %cst_8 : f32 to vector<16x64xf32>
    %18 = arith.maximumf %16, %17 : vector<16x64xf32>
    %19 = vector.extract_strided_slice %15 {offsets = [0, 64], sizes = [16, 64], strides = [1, 1]} : vector<16x128xf32> to vector<16x64xf32>
    %20 = vector.shape_cast %18 : vector<16x64xf32> to vector<1x16x64xf32>
    %cst_9 = arith.constant 0.000000e+00 : f32
    %21 = vector.broadcast %cst_9 : f32 to vector<1x1x64xf32>
    %22 = vector.extract_strided_slice %20 {offsets = [0, 0, 0], sizes = [1, 15, 64], strides = [1, 1, 1]} : vector<1x16x64xf32> to vector<1x15x64xf32>
    %23 = tpu.concatenate %21, %22 in 1 : vector<1x1x64xf32>, vector<1x15x64xf32> -> vector<1x16x64xf32>
    %24 = vector.extract_strided_slice %20 {offsets = [0, 1, 0], sizes = [1, 15, 64], strides = [1, 1, 1]} : vector<1x16x64xf32> to vector<1x15x64xf32>
    %cst_10 = arith.constant 0.000000e+00 : f32
    %25 = vector.broadcast %cst_10 : f32 to vector<1x1x64xf32>
    %26 = tpu.concatenate %24, %25 in 1 : vector<1x15x64xf32>, vector<1x1x64xf32> -> vector<1x16x64xf32>
    %c0_11 = arith.constant 0 : index
    %c0_12 = arith.constant 0 : index
    %c0_13 = arith.constant 0 : index
    %27 = vector.load %arg4[%c0_11, %c0_12, %c0_13] : memref<2x128x64xf32, #tpu.memory_space<vmem>>, vector<1x128x64xf32>
    %28 = vector.shape_cast %27 : vector<1x128x64xf32> to vector<128x64xf32>
    %c0_14 = arith.constant 0 : index
    %c0_15 = arith.constant 0 : index
    %c0_16 = arith.constant 0 : index
    %29 = vector.load %arg5[%c0_14, %c0_15, %c0_16] : memref<2x1x64xf32, #tpu.memory_space<vmem>>, vector<1x1x64xf32>
    %30 = vector.shape_cast %29 : vector<1x1x64xf32> to vector<1x64xf32>
    %31 = vector.shape_cast %23 : vector<1x16x64xf32> to vector<16x64xf32>
    %32 = vector.shape_cast %26 : vector<1x16x64xf32> to vector<16x64xf32>
    %33 = vector.extract_strided_slice %28 {offsets = [0, 0], sizes = [64, 64], strides = [1, 1]} : vector<128x64xf32> to vector<64x64xf32>
    %cst_17 = arith.constant dense<0.000000e+00> : vector<16x64xf32>
    %34 = tpu.matmul %31, %33, %cst_17 {dimension_numbers = #tpu.dot_dimension_numbers<[1], [0], [0], [1], [0, 0, 1, 1], [], []>} : vector<16x64xf32>, vector<64x64xf32>, vector<16x64xf32> -> vector<16x64xf32>
    %35 = vector.extract_strided_slice %28 {offsets = [64, 0], sizes = [64, 64], strides = [1, 1]} : vector<128x64xf32> to vector<64x64xf32>
    %cst_18 = arith.constant dense<0.000000e+00> : vector<16x64xf32>
    %36 = tpu.matmul %32, %35, %cst_18 {dimension_numbers = #tpu.dot_dimension_numbers<[1], [0], [0], [1], [0, 0, 1, 1], [], []>} : vector<16x64xf32>, vector<64x64xf32>, vector<16x64xf32> -> vector<16x64xf32>
    %37 = arith.addf %34, %36 : vector<16x64xf32>
    %38 = vector.broadcast %30 : vector<1x64xf32> to vector<16x64xf32>
    %39 = arith.addf %37, %38 : vector<16x64xf32>
    %cst_19 = arith.constant 0.000000e+00 : f32
    %40 = vector.broadcast %cst_19 : f32 to vector<16x64xf32>
    %41 = arith.maximumf %39, %40 : vector<16x64xf32>
    %42 = vector.shape_cast %41 : vector<16x64xf32> to vector<1x16x64xf32>
    %cst_20 = arith.constant 0.000000e+00 : f32
    %43 = vector.broadcast %cst_20 : f32 to vector<1x2x64xf32>
    %44 = vector.extract_strided_slice %42 {offsets = [0, 0, 0], sizes = [1, 14, 64], strides = [1, 1, 1]} : vector<1x16x64xf32> to vector<1x14x64xf32>
    %45 = tpu.concatenate %43, %44 in 1 : vector<1x2x64xf32>, vector<1x14x64xf32> -> vector<1x16x64xf32>
    %46 = vector.extract_strided_slice %42 {offsets = [0, 2, 0], sizes = [1, 14, 64], strides = [1, 1, 1]} : vector<1x16x64xf32> to vector<1x14x64xf32>
    %cst_21 = arith.constant 0.000000e+00 : f32
    %47 = vector.broadcast %cst_21 : f32 to vector<1x2x64xf32>
    %48 = tpu.concatenate %46, %47 in 1 : vector<1x14x64xf32>, vector<1x2x64xf32> -> vector<1x16x64xf32>
    %c1 = arith.constant 1 : index
    %c0_22 = arith.constant 0 : index
    %c0_23 = arith.constant 0 : index
    %49 = vector.load %arg4[%c1, %c0_22, %c0_23] : memref<2x128x64xf32, #tpu.memory_space<vmem>>, vector<1x128x64xf32>
    %50 = vector.shape_cast %49 : vector<1x128x64xf32> to vector<128x64xf32>
    %c1_24 = arith.constant 1 : index
    %c0_25 = arith.constant 0 : index
    %c0_26 = arith.constant 0 : index
    %51 = vector.load %arg5[%c1_24, %c0_25, %c0_26] : memref<2x1x64xf32, #tpu.memory_space<vmem>>, vector<1x1x64xf32>
    %52 = vector.shape_cast %51 : vector<1x1x64xf32> to vector<1x64xf32>
    %53 = vector.shape_cast %45 : vector<1x16x64xf32> to vector<16x64xf32>
    %54 = vector.shape_cast %48 : vector<1x16x64xf32> to vector<16x64xf32>
    %55 = vector.extract_strided_slice %50 {offsets = [0, 0], sizes = [64, 64], strides = [1, 1]} : vector<128x64xf32> to vector<64x64xf32>
    %cst_27 = arith.constant dense<0.000000e+00> : vector<16x64xf32>
    %56 = tpu.matmul %53, %55, %cst_27 {dimension_numbers = #tpu.dot_dimension_numbers<[1], [0], [0], [1], [0, 0, 1, 1], [], []>} : vector<16x64xf32>, vector<64x64xf32>, vector<16x64xf32> -> vector<16x64xf32>
    %57 = vector.extract_strided_slice %50 {offsets = [64, 0], sizes = [64, 64], strides = [1, 1]} : vector<128x64xf32> to vector<64x64xf32>
    %cst_28 = arith.constant dense<0.000000e+00> : vector<16x64xf32>
    %58 = tpu.matmul %54, %57, %cst_28 {dimension_numbers = #tpu.dot_dimension_numbers<[1], [0], [0], [1], [0, 0, 1, 1], [], []>} : vector<16x64xf32>, vector<64x64xf32>, vector<16x64xf32> -> vector<16x64xf32>
    %59 = arith.addf %56, %58 : vector<16x64xf32>
    %60 = vector.broadcast %52 : vector<1x64xf32> to vector<16x64xf32>
    %61 = arith.addf %59, %60 : vector<16x64xf32>
    %cst_29 = arith.constant 0.000000e+00 : f32
    %62 = vector.broadcast %cst_29 : f32 to vector<16x64xf32>
    %63 = arith.maximumf %61, %62 : vector<16x64xf32>
    %64 = arith.addf %63, %19 : vector<16x64xf32>
    %cst_30 = arith.constant 0.000000e+00 : f32
    %65 = vector.broadcast %cst_30 : f32 to vector<16x64xf32>
    %66 = arith.maximumf %64, %65 : vector<16x64xf32>
    %67 = vector.shape_cast %66 : vector<16x64xf32> to vector<1x16x64xf32>
    %68 = tpu.transpose %67, [0, 2, 1] : vector<1x16x64xf32> -> vector<1x64x16xf32>
    %c0_31 = arith.constant 0 : index
    %c0_32 = arith.constant 0 : index
    %c0_33 = arith.constant 0 : index
    %69 = vector.load %arg6[%c0_31, %c0_32, %c0_33] : memref<1x64x16xf32, #tpu.memory_space<vmem>>, vector<1x64x16xf32>
    tpu.vector_store %arg6[%c0_31, %c0_32, %c0_33], %68 {strides = array<i32>} : memref<1x64x16xf32, #tpu.memory_space<vmem>>, vector<1x64x16xf32>,
    return
  }
  func.func @transform_0(%arg0: i32) -> (i32, i32, i32) {
    %c0_i32 = arith.constant 0 : i32
    %c0_i32_0 = arith.constant 0 : i32
    %c0_i32_1 = arith.constant 0 : i32
    return %arg0, %c0_i32, %c0_i32_0 : i32, i32, i32
  }
  func.func @transform_1(%arg0: i32) -> (i32, i32) {
    %c0_i32 = arith.constant 0 : i32
    %c0_i32_0 = arith.constant 0 : i32
    %c0_i32_1 = arith.constant 0 : i32
    return %c0_i32, %c0_i32_0 : i32, i32
  }
  func.func @transform_2(%arg0: i32) -> (i32, i32) {
    %c0_i32 = arith.constant 0 : i32
    %c0_i32_0 = arith.constant 0 : i32
    %c0_i32_1 = arith.constant 0 : i32
    return %c0_i32, %c0_i32_0 : i32, i32
  }
  func.func @transform_3(%arg0: i32) -> (i32, i32, i32) {
    %c0_i32 = arith.constant 0 : i32
    %c0_i32_0 = arith.constant 0 : i32
    %c0_i32_1 = arith.constant 0 : i32
    %c0_i32_2 = arith.constant 0 : i32
    return %c0_i32, %c0_i32_0, %c0_i32_1 : i32, i32, i32
  }
  func.func @transform_4(%arg0: i32) -> (i32, i32, i32) {
    %c0_i32 = arith.constant 0 : i32
    %c0_i32_0 = arith.constant 0 : i32
    %c0_i32_1 = arith.constant 0 : i32
    %c0_i32_2 = arith.constant 0 : i32
    return %c0_i32, %c0_i32_0, %c0_i32_1 : i32, i32, i32
  }
  func.func @transform_5(%arg0: i32) -> (i32, i32, i32) {
    %c0_i32 = arith.constant 0 : i32
    %c0_i32_0 = arith.constant 0 : i32
    %c0_i32_1 = arith.constant 0 : i32
    return %arg0, %c0_i32, %c0_i32_0 : i32, i32, i32
  }
}

</mosaic_0001>

<bundles_post_ra>
// kernel: tpu_custom_call.1
= control target key start
LH: loop header
LB: loop body
LE: loop exit
PB: predicated region body
PF: predicated region fallthrough
CT: control target
= control target key end

     0   :  { %s1341_s18 = smov 0   ;;  %s1552_s0 = inlined_call_operand.vmem [shape: f32[2,64,16], index: 0, kind: input, shape index: {}]   ;;  %s1553_s1 = inlined_call_operand.vmem [shape: f32[128,128], index: 1, kind: input, shape index: {}]   ;;  %s1554_s2 = inlined_call_operand.vmem [shape: f32[1,128], index: 2, kind: input, shape index: {}]   ;;  %s1555_s3 = inlined_call_operand.vmem [shape: f32[2,128,64], index: 3, kind: input, shape index: {}]   ;;  %s1556_s4 = inlined_call_operand.vmem [shape: f32[2,1,64], index: 4, kind: input, shape index: {}]   ;;  %s1557_s5 = inlined_call_operand.vmem [shape: f32[2,64,16], index: 5, kind: output, shape index: {}]  }
   0x1 LB: > { %s971_s19 = sadd.s32 4294967295, %s1308_s18   ;;  %p975_p0 = scmp.ge.s32.totalorder %s1308_s18, 1  ;;  %s1308_s18 = sphi %s1341_s18, %s15_s18  }
   0x2   : > { %p187_p1 = scmp.lt.s32.totalorder %s1308_s18, 3 }
   0x4   : > { %p188_p2 = pnand %p975_p0, %p187_p1 }
   0x5   : > { %p215_p3 = scmp.lt.s32.totalorder (!%p188_p2), %s971_s19, 1  ;;  %v273_v0 = vld [vmem:[%s1553_s1] sm:$0xff] (!%p188_p2)  ;;  %v274_v1 = vld [vmem:[%s1553_s1 + $0x8] sm:$0xff] (!%p188_p2)  ;;  %v275_v5 = vld [vmem:[%s1553_s1 + $0x10] sm:$0xff] (!%p188_p2)  ;;  %vm290_vm0 = vcmask (!%p188_p2), 523264   ;;  %vm267_vm1 = vcmask (!%p188_p2), 1046528  }
   0x6   : > { %191 = sbr.rel (%p188_p2) target bundleno = 1009 (0x3f1), region = 40  ;;  %v281_v2 = vld [vmem:[%s1553_s1 + $0x40] sm:$0xff] (!%p188_p2)  ;;  %v1206_v3 = vpack.c.bf16 (!%p188_p2), %v274_v1, %v273_v0  ;;  %v282_v4 = vld [vmem:[%s1553_s1 + $0x48] sm:$0xff] (!%p188_p2)  ;;  %v276_v6 = vld [vmem:[%s1553_s1 + $0x18] sm:$0xff] (!%p188_p2)  ;;  %s1310_s17 = smov (!%p188_p2), 64   ;;  %vm462_vm2 = vcmask (!%p188_p2), 1040384  }
   0x7   : > { %v1190_v7 = vpack.c.bf16 (!%p188_p2), %v282_v4, %v281_v2  ;;  %v1210_v8 = vpack.c.bf16 (!%p188_p2), %v276_v6, %v275_v5  ;;  %v283_v9 = vld [vmem:[%s1553_s1 + $0x50] sm:$0xff] (!%p188_p2)  ;;  %v284_v10 = vld [vmem:[%s1553_s1 + $0x58] sm:$0xff] (!%p188_p2)  ;;  %v277_v11 = vld [vmem:[%s1553_s1 + $0x20] sm:$0xff] (!%p188_p2)  ;;  %vm668_vm3 = vcmask (!%p188_p2), 1045504   ;;  %vm662_vm4 = vcmask (!%p188_p2), 1041408  }
   0x8   : > { %1207 = vmatprep.subr.bf16.mxu0 (!%p188_p2), %v1206_v3  ;;  %v1194_v12 = vpack.c.bf16 (!%p188_p2), %v284_v10, %v283_v9  ;;  %v278_v13 = vld [vmem:[%s1553_s1 + $0x28] sm:$0xff] (!%p188_p2)  ;;  %v285_v15 = vld [vmem:[%s1553_s1 + $0x60] sm:$0xff] (!%p188_p2)  ;;  %v279_v19 = vld [vmem:[%s1553_s1 + $0x30] sm:$0xff] (!%p188_p2)  ;;  %vm907_vm5 = vcmask (!%p188_p2), 130048  }
   0x9   : > { %1209 = vmatpush3.bf16.msra.mxu0 (!%p188_p2), %v1206_v3  ;;  %1191 = vmatprep.subr.bf16.mxu1 (!%p188_p2), %v1190_v7  ;;  %v1214_v14 = vpack.c.bf16 (!%p188_p2), %v278_v13, %v277_v11  ;;  %v286_v16 = vld [vmem:[%s1553_s1 + $0x68] sm:$0xff] (!%p188_p2)  ;;  %v280_v21 = vld [vmem:[%s1553_s1 + $0x38] sm:$0xff] (!%p188_p2)  ;;  %v287_v23 = vld [vmem:[%s1553_s1 + $0x70] sm:$0xff] (!%p188_p2) }
   0xa   : > { %1211 = vmatprep.subr.bf16.mxu0 (!%p188_p2), %v1210_v8  ;;  %1193 = vmatpush3.bf16.msra.mxu1 (!%p188_p2), %v1190_v7  ;;  %v1198_v18 = vpack.c.bf16 (!%p188_p2), %v286_v16, %v285_v15  ;;  %v1218_v22 = vpack.c.bf16 (!%p188_p2), %v280_v21, %v279_v19  ;;  %v288_v24 = vld [vmem:[%s1553_s1 + $0x78] sm:$0xff] (!%p188_p2)  ;;  %v481_v28 = vld [vmem:[%s1555_s3 + $0x40] sm:$0xff] (!%p188_p2)  ;;  %v482_v29 = vld [vmem:[%s1555_s3 + $0x48] sm:$0xff] (!%p188_p2) }
   0xb   : > { %1195 = vmatprep.subr.bf16.mxu1 (!%p188_p2), %v1194_v12  ;;  %v1202_v25 = vpack.c.bf16 (!%p188_p2), %v288_v24, %v287_v23  ;;  %v1222_v30 = vpack.c.bf16 (!%p188_p2), %v482_v29, %v481_v28  ;;  %v483_v41 = vld [vmem:[%s1555_s3 + $0x50] sm:$0xff] (!%p188_p2)  ;;  %v484_v42 = vld [vmem:[%s1555_s3 + $0x58] sm:$0xff] (!%p188_p2)  ;;  %v485_v44 = vld [vmem:[%s1555_s3 + $0x60] sm:$0xff] (!%p188_p2) }
   0xc   : > { %v1226_v43 = vpack.c.bf16 (!%p188_p2), %v484_v42, %v483_v41  ;;  %v486_v45 = vld [vmem:[%s1555_s3 + $0x68] sm:$0xff] (!%p188_p2)  ;;  %v487_v47 = vld [vmem:[%s1555_s3 + $0x70] sm:$0xff] (!%p188_p2)  ;;  %v488_v48 = vld [vmem:[%s1555_s3 + $0x78] sm:$0xff] (!%p188_p2) }
   0xd   : > { %s1559_s19 = smov (!%p215_p3, %s971_s19), 1  ;;  %1213 = vmatpush3.bf16.msra.mxu0 %v1210_v8  ;;  %v1230_v46 = vpack.c.bf16 %v486_v45, %v485_v44  ;;  %v1234_v49 = vpack.c.bf16 %v488_v48, %v487_v47  ;;  %v473_v50 = vld [vmem:[%s1555_s3] sm:$0xff]  ;;  %v474_v51 = vld [vmem:[%s1555_s3 + $0x8] sm:$0xff]  ;;  %v1000_v56 = vld [vmem:[%s1555_s3 + $0xd0] sm:$0xff] }
   0xe   : > { %s1014_s15 = sshll.u32 %s1559_s19, 6  ;;  %1215 = vmatprep.subr.bf16.mxu0 %v1214_v14  ;;  %1197 = vmatpush3.bf16.msra.mxu1 %v1194_v12  ;;  %v1238_v52 = vpack.c.bf16 %v474_v51, %v473_v50  ;;  %v998_v54 = vld [vmem:[%s1555_s3 + $0xc0] sm:$0xff]  ;;  %v999_v55 = vld [vmem:[%s1555_s3 + $0xc8] sm:$0xff]  ;;  %v1001_v59 = vld [vmem:[%s1555_s3 + $0xd8] sm:$0xff] }
   0xf   : > { %s1387_s20 = scalar_lea.vmem %s1552_s0, %s1014_s15  ;;  %1199 = vmatprep.subr.bf16.mxu1 %v1198_v18  ;;  %v1254_v58 = vpack.c.bf16 %v999_v55, %v998_v54  ;;  %v1258_v60 = vpack.c.bf16 %v1001_v59, %v1000_v56  ;;  %v984_v61 = vld [vmem:[%s1554_s2] ss:$0 sm:$0xff]  ;;  %v475_v8 = vld [vmem:[%s1555_s3 + $0x10] sm:$0xff]  ;;  %v476_v9 = vld [vmem:[%s1555_s3 + $0x18] sm:$0xff]  ;;  %s224_s16 = scalar_lea.vmem %s1557_s5, %s1014_s15 }
  0x10   : > { %v225_v17 = vld [vmem:[%s1387_s20] sm:$0xff]  ;;  %v226_v20 = vld [vmem:[%s1387_s20 + $0x8] sm:$0xff]  ;;  %v227_v26 = vld [vmem:[%s1387_s20 + $0x10] sm:$0xff]  ;;  %v1242_v13 = vpack.c.bf16 %v476_v9, %v475_v8 }
  0x11   : > { %233 = vxpose.xlu0.b32.start [1/8] (short) (narrow) %v225_v17, 16  ;;  %1217 = vmatpush3.bf16.msra.mxu0 %v1214_v14  ;;  %v228_v27 = vld [vmem:[%s1387_s20 + $0x18] sm:$0xff]  ;;  %v229_v31 = vld [vmem:[%s1387_s20 + $0x20] sm:$0xff]  ;;  %v230_v32 = vld [vmem:[%s1387_s20 + $0x28] sm:$0xff] }
  0x12   : > { %1219 = vmatprep.subr.bf16.mxu0 %v1218_v22  ;;  %1201 = vmatpush3.bf16.msra.mxu1 %v1198_v18  ;;  %v231_v33 = vld [vmem:[%s1387_s20 + $0x30] sm:$0xff]  ;;  %v232_v34 = vld [vmem:[%s1387_s20 + $0x38] sm:$0xff]  ;;  %v477_v16 = vld [vmem:[%s1555_s3 + $0x20] sm:$0xff] }
  0x13   : > { %1203 = vmatprep.subr.bf16.mxu1 %v1202_v25  ;;  %v478_v17 = vld [vmem:[%s1555_s3 + $0x28] sm:$0xff]  ;;  %v480_v21 = vld [vmem:[%s1555_s3 + $0x38] sm:$0xff]  ;;  %v1002_v23 = vld [vmem:[%s1555_s3 + $0xe0] sm:$0xff] }
  0x14   : > { %v1246_v19 = vpack.c.bf16 %v478_v17, %v477_v16  ;;  %v1003_v24 = vld [vmem:[%s1555_s3 + $0xe8] sm:$0xff]  ;;  %v990_v29 = vld [vmem:[%s1555_s3 + $0x80] sm:$0xff]  ;;  %v992_v41 = vld [vmem:[%s1555_s3 + $0x90] sm:$0xff] }
  0x15   : > { %234 = vxpose.xlu0.b32.cont [2/8] (short) (narrow) %v226_v20, 16  ;;  %1221 = vmatpush3.bf16.msra.mxu0 %v1218_v22  ;;  %v479_v20 = vld [vmem:[%s1555_s3 + $0x30] sm:$0xff]  ;;  %v993_v42 = vld [vmem:[%s1555_s3 + $0x98] sm:$0xff]  ;;  %v995_v50 = vld [vmem:[%s1555_s3 + $0xa8] sm:$0xff] }
  0x16   : > { %1205 = vmatpush3.bf16.msra.mxu1 %v1202_v25  ;;  %1255 = vmatprep.subr.bf16.mxu0 %v1254_v58  ;;  %v1250_v22 = vpack.c.bf16 %v480_v21, %v479_v20  ;;  %v1262_v25 = vpack.c.bf16 %v1003_v24, %v1002_v23  ;;  %v997_v54 = vld [vmem:[%s1555_s3 + $0xb8] sm:$0xff]  ;;  %v1011_v56 = vld [vmem:[%s1556_s4 + $0x1] ss:$0 sm:$0xff] }
  0x17   : > { %1223 = vmatprep.subr.bf16.mxu1 %v1222_v30 }
  0x19   : > { %235 = vxpose.xlu0.b32.cont [3/8] (short) (narrow) %v227_v26, 16  ;;  %v1004_v26 = vld [vmem:[%s1555_s3 + $0xf0] sm:$0xff] }
  0x1d   : > { %236 = vxpose.xlu0.b32.cont [4/8] (short) (narrow) %v228_v27, 16  ;;  %v1005_v27 = vld [vmem:[%s1555_s3 + $0xf8] sm:$0xff] }
  0x1e   : > { %v1266_v28 = vpack.c.bf16 %v1005_v27, %v1004_v26 }
  0x21   : > { %237 = vxpose.xlu0.b32.cont [5/8] (short) (narrow) %v229_v31, 16 }
  0x25   : > { %238 = vxpose.xlu0.b32.cont [6/8] (short) (narrow) %v230_v32, 16  ;;  %v989_v32 = vld [vmem:[%s1556_s4] ss:$0 sm:$0xff] }
  0x29   : > { %239 = vxpose.xlu0.b32.cont [7/8] (short) (narrow) %v231_v33, 16 }
  0x2d   : > { %240 = vxpose.xlu0.b32.end [8/8] (short) (narrow) %v232_v34, 16 }
  0x91   : > { %v249_v35 = vpop.trf.xlu0 }
  0x92   : > { %1111 = vmatprep.mubr.msk.f32.mxu0 %vm290_vm0, %v249_v35  ;;  %v268_v37 = vrot.slane %v249_v35, 1 }
  0x95   : > { %v250_v36 = vpop.trf.xlu0 }
  0x96   : > { %v269_v38 = vrot.slane %v250_v36, 1  ;;  %1112 = vmatmul.mubr.msk.f32.vlgmr.msra.gmra.mrb[0].mxu0 %vm290_vm0, %v250_v36 }
  0x97   : > { %1257 = vmatpush3.bf16.msra.mxu0 %v1254_v58 }
  0x98   : > { %v272_v39 = vsel %vm267_vm1, %v269_v38, 0.0  ;;  %v270_v40 = vsel %vm267_vm1, %v268_v37, %v269_v38  ;;  %1259 = vmatprep.subr.bf16.mxu0 %v1258_v60 }
  0x99   : > { %1092 = vmatprep.mubr.msk.f32.mxu1 %vm290_vm0, %v270_v40 }
  0x9a   : > { %1093 = vmatmul.mubr.msk.f32.vlgmr.msra.gmra.mrb[0].mxu1 %vm290_vm0, %v272_v39 }
  0x9b   : > { %1225 = vmatpush3.bf16.msra.mxu1 %v1222_v30  ;;  %1261 = vmatpush3.bf16.msra.mxu0 %v1258_v60  ;;  %v991_v30 = vld [vmem:[%s1555_s3 + $0x88] sm:$0xff] }
  0x9c   : > { %1227 = vmatprep.subr.bf16.mxu1 %v1226_v43  ;;  %1263 = vmatprep.subr.bf16.mxu0 %v1262_v25  ;;  %v1270_v31 = vpack.c.bf16 %v991_v30, %v990_v29 }
  0x9f   : > { %1229 = vmatpush3.bf16.msra.mxu1 %v1226_v43  ;;  %1265 = vmatpush3.bf16.msra.mxu0 %v1262_v25 }
  0xa0   : > { %1231 = vmatprep.subr.bf16.mxu1 %v1230_v46  ;;  %1267 = vmatprep.subr.bf16.mxu0 %v1266_v28 }
  0xa3   : > { %1233 = vmatpush3.bf16.msra.mxu1 %v1230_v46  ;;  %1269 = vmatpush3.bf16.msra.mxu0 %v1266_v28  ;;  %v1274_v46 = vpack.c.bf16 %v993_v42, %v992_v41 }
  0xa4   : > { %1235 = vmatprep.subr.bf16.mxu1 %v1234_v49  ;;  %1271 = vmatprep.subr.bf16.mxu0 %v1270_v31 }
  0xa7   : > { %1237 = vmatpush3.bf16.msra.mxu1 %v1234_v49  ;;  %v994_v49 = vld [vmem:[%s1555_s3 + $0xa0] sm:$0xff] }
  0xa8   : > { %1239 = vmatprep.subr.bf16.mxu1 %v1238_v52 }
 0x169   : > { %v1113_v53 = vpop.f32.mrb[0].mxu0 }
 0x16a   : > { %v441_v57 = vpop.f32.mrb[1].mxu0 }
 0x16d   : > { %v1094_v62 = vpop.f32.mrb[0].mxu1 }
 0x16e   : > { %v447_v63 = vadd.f32 %v1113_v53, %v1094_v62  ;;  %v362_v0 = vpop.f32.mrb[1].mxu1  ;;  %v996_v53 = vld [vmem:[%s1555_s3 + $0xb0] sm:$0xff] }
 0x16f   : > { %v442_v1 = vadd.f32 %v441_v57, %v362_v0  ;;  %v1282_v55 = vpack.c.bf16 %v997_v54, %v996_v53 }
 0x170   : > { %v457_v2 = vadd.f32 %v984_v61, %v447_v63 }
 0x171   : > { %v456_v3 = vadd.f32 %v984_v61, %v442_v1 }
 0x172   : > { %v459_v4 = vmax.f32 %v457_v2, 0.0 }
 0x173   : > { %865 = vrot.lane.b32.xlu1 %v456_v3, %s1310_s17  ;;  %v458_v5 = vmax.f32 %v456_v3, 0.0 }
 0x174   : > { %v464_v6 = vrot.slane %v459_v4, 7  ;;  %v469_v7 = vrot.slane %v459_v4, 1 }
 0x175   : > { %v468_v10 = vrot.slane %v458_v5, 1  ;;  %v463_v11 = vrot.slane %v458_v5, 7 }
 0x176   : > { %v472_v15 = vsel %vm267_vm1, %v469_v7, 0.0 }
 0x177   : > { %867 = vrot.lane.b32.xlu1 %v457_v2, %s1310_s17  ;;  %v470_v12 = vsel %vm267_vm1, %v468_v10, %v469_v7  ;;  %v465_v14 = vsel %vm462_vm2, %v463_v11, %v464_v6  ;;  %v467_v18 = vsel %vm462_vm2, 0.0, %v463_v11 }
 0x178   : > { %1130 = vmatprep.mubr.msk.f32.mxu1 %vm290_vm0, %v470_v12 }
 0x179   : > { %1131 = vmatmul.mubr.msk.f32.vlgmr.msra.gmra.mrb[2].mxu1 %vm290_vm0, %v472_v15 }
 0x17a   : > { %1241 = vmatpush3.bf16.msra.mxu1 %v1238_v52  ;;  %1149 = vmatprep.mubr.msk.f32.mxu1 %vm290_vm0, %v467_v18  ;;  %v1278_v52 = vpack.c.bf16 %v995_v50, %v994_v49 }
 0x17b   : > { %1243 = vmatprep.subr.bf16.mxu1 %v1242_v13 }
 0x17e   : > { %1245 = vmatpush3.bf16.msra.mxu1 %v1242_v13 }
 0x17f   : > { %1247 = vmatprep.subr.bf16.mxu1 %v1246_v19 }
 0x182   : > { %1249 = vmatpush3.bf16.msra.mxu1 %v1246_v19 }
 0x183   : > { %1251 = vmatprep.subr.bf16.mxu1 %v1250_v22 }
 0x186   : > { %1253 = vmatpush3.bf16.msra.mxu1 %v1250_v22 }
 0x189   : > { %1150 = vmatmul.mubr.msk.f32.vlgmr.msra.gmra.mrb[2].mxu1 %vm290_vm0, %v465_v14 }
 0x1e5   : > { %v866_v58 = vpop.permute.xlu1 %865 }
 0x1e9   : > { %v868_v1 = vpop.permute.xlu1 %867 }
 0x25c   : > { %v1151_v33 = vpop.f32.mrb[2].mxu1 }
 0x25d   : > { %v657_v34 = vadd.f32 %v1151_v33, %v989_v32  ;;  %v641_v35 = vpop.f32.mrb[3].mxu1 }
 0x25e   : > { %v656_v36 = vadd.f32 %v989_v32, %v641_v35 }
 0x25f   : > { %v659_v37 = vmax.f32 %v657_v34, 0.0 }
 0x260   : > { %v658_v38 = vmax.f32 %v656_v36, 0.0 }
 0x261   : > { %v664_v39 = vrot.slane %v659_v37, 6  ;;  %v670_v40 = vrot.slane %v659_v37, 2 }
 0x262   : > { %v663_v43 = vrot.slane %v658_v38, 6  ;;  %v669_v44 = vrot.slane %v658_v38, 2 }
 0x263   : > { %v673_v48 = vsel %vm668_vm3, %v670_v40, 0.0 }
 0x264   : > { %v671_v45 = vsel %vm668_vm3, %v669_v44, %v670_v40  ;;  %v665_v47 = vsel %vm662_vm4, %v663_v43, %v664_v39  ;;  %v667_v51 = vsel %vm662_vm4, 0.0, %v663_v43 }
 0x265   : > { %1168 = vmatprep.mubr.msk.f32.mxu0 %vm290_vm0, %v671_v45 }
 0x266   : > { %1169 = vmatmul.mubr.msk.f32.vlgmr.msra.gmra.mrb[2].mxu0 %vm290_vm0, %v673_v48 }
 0x267   : > { %1273 = vmatpush3.bf16.msra.mxu0 %v1270_v31  ;;  %1187 = vmatprep.mubr.msk.f32.mxu0 %vm290_vm0, %v667_v51 }
 0x268   : > { %1275 = vmatprep.subr.bf16.mxu0 %v1274_v46 }
 0x26b   : > { %1277 = vmatpush3.bf16.msra.mxu0 %v1274_v46 }
 0x26c   : > { %1279 = vmatprep.subr.bf16.mxu0 %v1278_v52 }
 0x26f   : > { %1281 = vmatpush3.bf16.msra.mxu0 %v1278_v52 }
 0x270   : > { %1283 = vmatprep.subr.bf16.mxu0 %v1282_v55 }
 0x273   : > { %1285 = vmatpush3.bf16.msra.mxu0 %v1282_v55 }
 0x276   : > { %1188 = vmatmul.mubr.msk.f32.vlgmr.msra.gmra.mrb[2].mxu0 %vm290_vm0, %v665_v47 }
 0x349   : > { %v1189_v57 = vpop.f32.mrb[2].mxu0 }
 0x34a   : > { %v860_v59 = vadd.f32 %v1189_v57, %v1011_v56  ;;  %v844_v60 = vpop.f32.mrb[3].mxu0 }
 0x34b   : > { %v859_v61 = vadd.f32 %v1011_v56, %v844_v60 }
 0x34c   : > { %v862_v62 = vmax.f32 %v860_v59, 0.0 }
 0x34d   : > { %v861_v63 = vmax.f32 %v859_v61, 0.0 }
 0x34e   : > { %v872_v2 = vadd.f32 %v868_v1, %v862_v62 }
 0x34f   : > { %v871_v0 = vadd.f32 %v866_v58, %v861_v63 }
 0x350   : > { %v874_v4 = vmax.f32 %v872_v2, 0.0 }
 0x351   : > { %v873_v3 = vmax.f32 %v871_v0, 0.0 }
 0x353   : > { %875 = vxpose.xlu1.b32.start [1/2] (short) (narrow) %v873_v3, 64 }
 0x357   : > { %876 = vxpose.xlu1.b32.end [2/2] (short) (narrow) %v874_v4, 64 }
 0x3d3   : > { %v891_v5 = vpop.trf.xlu1 }
 0x3d4   : > { %908 = vst.msk [vmem:[%s224_s16] sm:$0xff] %vm907_vm5, %v891_v5 }
 0x3d7   : > { %v892_v6 = vpop.trf.xlu1 }
 0x3d8   : > { %909 = vst.msk [vmem:[%s224_s16 + $0x8] sm:$0xff] %vm907_vm5, %v892_v6 }
 0x3db   : > { %v893_v7 = vpop.trf.xlu1 }
 0x3dc   : > { %910 = vst.msk [vmem:[%s224_s16 + $0x10] sm:$0xff] %vm907_vm5, %v893_v7 }
 0x3df   : > { %v894_v8 = vpop.trf.xlu1 }
 0x3e0   : > { %911 = vst.msk [vmem:[%s224_s16 + $0x18] sm:$0xff] %vm907_vm5, %v894_v8 }
 0x3e3   : > { %v895_v9 = vpop.trf.xlu1 }
 0x3e4   : > { %912 = vst.msk [vmem:[%s224_s16 + $0x20] sm:$0xff] %vm907_vm5, %v895_v9 }
 0x3e7   : > { %v896_v10 = vpop.trf.xlu1 }
 0x3e8   : > { %913 = vst.msk [vmem:[%s224_s16 + $0x28] sm:$0xff] %vm907_vm5, %v896_v10 }
 0x3eb   : > { %v897_v11 = vpop.trf.xlu1 }
 0x3ec   : > { %914 = vst.msk [vmem:[%s224_s16 + $0x30] sm:$0xff] %vm907_vm5, %v897_v11 }
 0x3ef   : > { %v898_v12 = vpop.trf.xlu1 }
 0x3f0   : > { %915 = vst.msk [vmem:[%s224_s16 + $0x38] sm:$0xff] %vm907_vm5, %v898_v12 }
 0x3f1 PF: > { %s15_s18 = sadd.s32 1, %s1308_s18  }
 0x3f2   : > { %p12_p4 = scmp.ge.s32.totalorder %s15_s18, 4  }
 0x3f4   :  { %14 = sbr.rel (!%p12_p4) target bundleno = 1 (0x1), region = 72 }

</bundles_post_ra>
